<compile_context>
chip_gen: v7x
topology: tpu7x:2x2x1
jax: 0.10.0
libtpu: 0.0.40
codegen_flags: <defaults>
</compile_context>

<pallas_src>
import functools

import jax
import jax.numpy as jnp
from jax.experimental import pallas as pl
from jax.experimental.pallas import tpu as pltpu


def _encoder_kernel(x_ref, w1_ref, b1_ref, w2_ref, b2_ref, wh_ref, bh_ref,
                    out_ref, acc_ref, *, latent_dim):
    k = pl.program_id(1)

    # ---- fc1 partial matmul, accumulated in f32 across the K (D) grid axis ----
    @pl.when(k == 0)
    def _():
        acc_ref[...] = jnp.zeros_like(acc_ref)

    acc_ref[...] += jnp.dot(x_ref[...], w1_ref[...],
                            preferred_element_type=jnp.float32)

    # ---- on the last K step: bias+SiLU, fc2+SiLU, fused heads, in-kernel exp ----
    @pl.when(k == pl.num_programs(1) - 1)
    def _():
        h1 = acc_ref[...] + b1_ref[...]
        h1 = h1 * jax.nn.sigmoid(h1)                                  # SiLU (f32)

        h2 = jnp.dot(h1.astype(jnp.bfloat16), w2_ref[...],
                     preferred_element_type=jnp.float32) + b2_ref[...]
        h2 = h2 * jax.nn.sigmoid(h2)

        # Fused heads: lanes [0,L) = mu, [L,2L) = logvar, rest zero-pad.
        head = jnp.dot(h2.astype(jnp.bfloat16), wh_ref[...],
                       preferred_element_type=jnp.float32) + bh_ref[...]

        lane = jax.lax.broadcasted_iota(jnp.int32, head.shape, 1)
        is_logvar = (lane >= latent_dim) & (lane < 2 * latent_dim)
        # torch reference: sigma = exp(fc_var(out))  (full logvar, NOT 0.5*logvar)
        out_ref[...] = jnp.where(is_logvar, jnp.exp(head), head)


def _pick_batch_tile(B, batch_tile):
    """Pick TB: multiple of 16 when TB < B; >=2 grid steps for moderate B (v7x)."""
    if B <= 16 or B <= batch_tile // 2:
        return B                        # single full-batch tile (block == full dim)
    tb = min(batch_tile, -(-B // 2))    # aim for >= 2 batch steps
    tb = max(16, (tb // 16) * 16)
    return min(tb, B)


def variational_conv_encoder(x, params, *, batch_tile=512, k_tile=2048):
    """x: (B, C, H, W) float32. Returns (mu, sigma), each (B, latent_dim) float32."""
    w1, b1, w2, b2, wm, bm, wv, bv = params
    B = x.shape[0]

    # bf16 input slab: halves the dominant per-step DMA; MXU sees bf16 anyway.
    x_flat = x.reshape(B, -1).astype(jnp.bfloat16)
    D = x_flat.shape[1]
    H1, H2 = w1.shape[1], w2.shape[1]                                 # 256, 128
    L = wm.shape[1]

    # --- fuse mu/logvar heads, pad to a lane-dense (multiple of 128) width ---
    head_w = jnp.concatenate([wm, wv], axis=1)                        # (128, 2L)
    head_b = jnp.concatenate([bm, bv], axis=1)                        # (1, 2L)
    head_pad = max(128, ((2 * L + 127) // 128) * 128)
    pad = head_pad - 2 * L
    if pad:
        head_w = jnp.pad(head_w, ((0, 0), (0, pad)))
        head_b = jnp.pad(head_b, ((0, 0), (0, pad)))

    # --- bf16 weights (native MXU dtype, halves weight DMA); biases stay f32 ---
    w1b = w1.astype(jnp.bfloat16)
    w2b = w2.astype(jnp.bfloat16)
    whb = head_w.astype(jnp.bfloat16)

    # --- K (reduction) tiling of D: keeps w1/x blocks inside VMEM for huge D ---
    if D > k_tile:
        TK = k_tile                                                   # multiple of 128
        D_eff = pl.cdiv(D, TK) * TK
        if D_eff != D:                                                # zero-pad: no-op in matmul
            x_flat = jnp.pad(x_flat, ((0, 0), (0, D_eff - D)))
            w1b = jnp.pad(w1b, ((0, D_eff - D), (0, 0)))
    else:
        TK = D
        D_eff = D
    nk = D_eff // TK

    # --- batch tiling ---
    TB = _pick_batch_tile(B, batch_tile)
    nb = pl.cdiv(B, TB)
    grid = (nb, nk)

    row = lambda i, k: (i, 0)       # batch-tiled, K-invariant
    xmap = lambda i, k: (i, k)      # batch- and K-tiled
    w1map = lambda i, k: (k, 0)     # K-tiled
    const = lambda i, k: (0, 0)     # VMEM-resident weights/biases

    flops = 2 * B * (D_eff * H1 + H1 * H2 + H2 * head_pad)
    transcendentals = B * (2 * (H1 + H2) + L)          # sigmoid ~ exp+recip, + exp(logvar)
    bytes_accessed = (x_flat.size * 2 + w1b.size * 2 + w2b.size * 2 + whb.size * 2
                      + (b1.size + b2.size + head_b.size) * 4 + B * head_pad * 4)

    out = pl.pallas_call(
        functools.partial(_encoder_kernel, latent_dim=L),
        out_shape=jax.ShapeDtypeStruct((B, head_pad), jnp.float32),
        grid=grid,
        in_specs=[
            pl.BlockSpec((TB, TK), xmap),
            pl.BlockSpec((TK, H1), w1map),
            pl.BlockSpec((1, H1), const),
            pl.BlockSpec((H1, H2), const),
            pl.BlockSpec((1, H2), const),
            pl.BlockSpec((H2, head_pad), const),
            pl.BlockSpec((1, head_pad), const),
        ],
        out_specs=pl.BlockSpec((TB, head_pad), row),
        scratch_shapes=[pltpu.VMEM((TB, H1), jnp.float32)],
        compiler_params=pltpu.CompilerParams(
            dimension_semantics=("parallel", "arbitrary")),
        cost_estimate=pl.CostEstimate(flops=flops,
                                      transcendentals=transcendentals,
                                      bytes_accessed=bytes_accessed),
    )(x_flat, w1b, b1, w2b, b2, whb, head_b)

    mu = out[:, :L]
    sigma = out[:, L:2 * L]          # exp already applied in-kernel
    return mu, sigma


def init_params(key, in_dim, latent_dim):
    """Deterministic init mimicking nn.Linear default (uniform +-1/sqrt(fan_in)).
    Weights stored as (fan_in, fan_out) so the kernel does x @ W + b.
    Biases stored as (1, fan_out) for clean 2-D broadcasting on TPU."""
    dims = [(in_dim, 256), (256, 128), (128, latent_dim), (128, latent_dim)]
    params = []
    for (fi, fo) in dims:
        key, kw, kb = jax.random.split(key, 3)
        bound = 1.0 / jnp.sqrt(fi)
        w = jax.random.uniform(kw, (fi, fo), jnp.float32, -bound, bound)
        b = jax.random.uniform(kb, (1, fo), jnp.float32, -bound, bound)
        params += [w, b]
    return tuple(params)


def _reference(x, params):
    """Plain-JAX reference with the same bf16-operand / f32-accumulate recipe.
    NOTE: vs a pure-f32 PyTorch forward the bf16 matmuls introduce ~1e-3 rel
    error for K~1e3; this precision trade-off is intentional."""
    w1, b1, w2, b2, wm, bm, wv, bv = params
    o = x.reshape(x.shape[0], -1).astype(jnp.bfloat16)
    h1 = jnp.dot(o, w1.astype(jnp.bfloat16),
                 preferred_element_type=jnp.float32) + b1
    h1 = h1 * jax.nn.sigmoid(h1)
    h2 = jnp.dot(h1.astype(jnp.bfloat16), w2.astype(jnp.bfloat16),
                 preferred_element_type=jnp.float32) + b2
    h2 = h2 * jax.nn.sigmoid(h2)
    mu = jnp.dot(h2.astype(jnp.bfloat16), wm.astype(jnp.bfloat16),
                 preferred_element_type=jnp.float32) + bm
    lv = jnp.dot(h2.astype(jnp.bfloat16), wv.astype(jnp.bfloat16),
                 preferred_element_type=jnp.float32) + bv
    return mu, jnp.exp(lv)


if __name__ == "__main__":
    # Small shapes consistent with the module: batch=2, ch=4, spatial=16, latent=20
    B, C, H, W = 2, 4, 16, 16
    latent_dim = 20
    in_dim = C * H * W

    key = jax.random.PRNGKey(0)
    key, kx = jax.random.split(key)
    x = jax.random.normal(kx, (B, C, H, W), jnp.float32)
    params = init_params(key, in_dim, latent_dim)

    mu, sigma = variational_conv_encoder(x, params)
    jax.block_until_ready((mu, sigma))

    mu_ref, sigma_ref = _reference(x, params)
    assert mu.shape == (B, latent_dim) and sigma.shape == (B, latent_dim)
    assert jnp.allclose(mu, mu_ref, atol=2e-3, rtol=2e-3)
    assert jnp.allclose(sigma, sigma_ref, atol=2e-3, rtol=2e-3)

    print("KERNEL_OK")
</pallas_src>

<mosaic_0001>
module attributes {stable_mosaic.version = 11 : i64} {
  func.func @_encoder_kernel(%arg0: i32, %arg1: i32, %arg2: memref<2x1024xbf16, #tpu.memory_space<vmem>>, %arg3: memref<1024x256xbf16, #tpu.memory_space<vmem>>, %arg4: memref<1x256xf32, #tpu.memory_space<vmem>>, %arg5: memref<256x128xbf16, #tpu.memory_space<vmem>>, %arg6: memref<1x128xf32, #tpu.memory_space<vmem>>, %arg7: memref<128x128xbf16, #tpu.memory_space<vmem>>, %arg8: memref<1x128xf32, #tpu.memory_space<vmem>>, %arg9: memref<2x128xf32, #tpu.memory_space<vmem>>, %arg10: memref<2x256xf32, #tpu.memory_space<vmem>>) attributes {dimension_semantics = [#tpu.dimension_semantics<parallel>, #tpu.dimension_semantics<arbitrary>], iteration_bounds = array<i64: 1, 1>, scalar_prefetch = 0 : i64, scratch_operands = 1 : i64, tpu.core_type = #tpu.core_type<tc>, window_params = [{transform_indices = @transform_0, window_bounds = array<i64: 2, 1024>}, {transform_indices = @transform_1, window_bounds = array<i64: 1024, 256>}, {pipeline_mode = #tpu.pipeline_mode<synchronous>, transform_indices = @transform_2, window_bounds = array<i64: 1, 256>}, {pipeline_mode = #tpu.pipeline_mode<synchronous>, transform_indices = @transform_3, window_bounds = array<i64: 256, 128>}, {pipeline_mode = #tpu.pipeline_mode<synchronous>, transform_indices = @transform_4, window_bounds = array<i64: 1, 128>}, {pipeline_mode = #tpu.pipeline_mode<synchronous>, transform_indices = @transform_5, window_bounds = array<i64: 128, 128>}, {pipeline_mode = #tpu.pipeline_mode<synchronous>, transform_indices = @transform_6, window_bounds = array<i64: 1, 128>}, {transform_indices = @transform_7, window_bounds = array<i64: 2, 128>}]} {
    %c0_i32 = arith.constant 0 : i32
    %0 = arith.cmpi eq, %arg1, %c0_i32 : i32
    %1 = arith.extui %0 : i1 to i32
    %c0_i32_0 = arith.constant 0 : i32
    %2 = arith.cmpi ne, %1, %c0_i32_0 : i32
    scf.if %2 {
      %cst_10 = arith.constant 0.000000e+00 : f32
      %12 = vector.broadcast %cst_10 : f32 to vector<2x256xf32>
      %c0_11 = arith.constant 0 : index
      %c0_12 = arith.constant 0 : index
      %13 = vector.load %arg10[%c0_11, %c0_12] : memref<2x256xf32, #tpu.memory_space<vmem>>, vector<2x256xf32>
      tpu.vector_store %arg10[%c0_11, %c0_12], %12 {strides = array<i32>} : memref<2x256xf32, #tpu.memory_space<vmem>>, vector<2x256xf32>,
    } else {
    }
    %c0 = arith.constant 0 : index
    %c0_1 = arith.constant 0 : index
    %3 = vector.load %arg10[%c0, %c0_1] : memref<2x256xf32, #tpu.memory_space<vmem>>, vector<2x256xf32>
    %c0_2 = arith.constant 0 : index
    %c0_3 = arith.constant 0 : index
    %4 = vector.load %arg2[%c0_2, %c0_3] : memref<2x1024xbf16, #tpu.memory_space<vmem>>, vector<2x1024xbf16>
    %c0_4 = arith.constant 0 : index
    %c0_5 = arith.constant 0 : index
    %5 = vector.load %arg3[%c0_4, %c0_5] : memref<1024x256xbf16, #tpu.memory_space<vmem>>, vector<1024x256xbf16>
    %cst = arith.constant dense<0.000000e+00> : vector<2x256xf32>
    %6 = tpu.matmul %4, %5, %cst {dimension_numbers = #tpu.dot_dimension_numbers<[1], [0], [0], [1], [0, 0, 1, 1], [], []>} : vector<2x1024xbf16>, vector<1024x256xbf16>, vector<2x256xf32> -> vector<2x256xf32>
    %7 = arith.addf %3, %6 : vector<2x256xf32>
    %c0_6 = arith.constant 0 : index
    %c0_7 = arith.constant 0 : index
    %8 = vector.load %arg10[%c0_6, %c0_7] : memref<2x256xf32, #tpu.memory_space<vmem>>, vector<2x256xf32>
    tpu.vector_store %arg10[%c0_6, %c0_7], %7 {strides = array<i32>} : memref<2x256xf32, #tpu.memory_space<vmem>>, vector<2x256xf32>,
    %c0_i32_8 = arith.constant 0 : i32
    %9 = arith.cmpi eq, %arg1, %c0_i32_8 : i32
    %10 = arith.extui %9 : i1 to i32
    %c0_i32_9 = arith.constant 0 : i32
    %11 = arith.cmpi ne, %10, %c0_i32_9 : i32
    scf.if %11 {
      %c0_10 = arith.constant 0 : index
      %c0_11 = arith.constant 0 : index
      %12 = vector.load %arg10[%c0_10, %c0_11] : memref<2x256xf32, #tpu.memory_space<vmem>>, vector<2x256xf32>
      %c0_12 = arith.constant 0 : index
      %c0_13 = arith.constant 0 : index
      %13 = vector.load %arg4[%c0_12, %c0_13] : memref<1x256xf32, #tpu.memory_space<vmem>>, vector<1x256xf32>
      %14 = vector.broadcast %13 : vector<1x256xf32> to vector<2x256xf32>
      %15 = arith.addf %12, %14 : vector<2x256xf32>
      %16 = arith.negf %15 : vector<2x256xf32>
      %17 = math.exp %16 : vector<2x256xf32>
      %cst_14 = arith.constant 1.000000e+00 : f32
      %18 = vector.broadcast %cst_14 : f32 to vector<2x256xf32>
      %19 = arith.addf %18, %17 : vector<2x256xf32>
      %20 = arith.divf %18, %19 : vector<2x256xf32>
      %21 = arith.mulf %15, %20 : vector<2x256xf32>
      %22 = arith.truncf %21 : vector<2x256xf32> to vector<2x256xbf16>
      %c0_15 = arith.constant 0 : index
      %c0_16 = arith.constant 0 : index
      %23 = vector.load %arg5[%c0_15, %c0_16] : memref<256x128xbf16, #tpu.memory_space<vmem>>, vector<256x128xbf16>
      %cst_17 = arith.constant dense<0.000000e+00> : vector<2x128xf32>
      %24 = tpu.matmul %22, %23, %cst_17 {dimension_numbers = #tpu.dot_dimension_numbers<[1], [0], [0], [1], [0, 0, 1, 1], [], []>} : vector<2x256xbf16>, vector<256x128xbf16>, vector<2x128xf32> -> vector<2x128xf32>
      %c0_18 = arith.constant 0 : index
      %c0_19 = arith.constant 0 : index
      %25 = vector.load %arg6[%c0_18, %c0_19] : memref<1x128xf32, #tpu.memory_space<vmem>>, vector<1x128xf32>
      %26 = vector.broadcast %25 : vector<1x128xf32> to vector<2x128xf32>
      %27 = arith.addf %24, %26 : vector<2x128xf32>
      %28 = arith.negf %27 : vector<2x128xf32>
      %29 = math.exp %28 : vector<2x128xf32>
      %cst_20 = arith.constant 1.000000e+00 : f32
      %30 = vector.broadcast %cst_20 : f32 to vector<2x128xf32>
      %31 = arith.addf %30, %29 : vector<2x128xf32>
      %32 = arith.divf %30, %31 : vector<2x128xf32>
      %33 = arith.mulf %27, %32 : vector<2x128xf32>
      %34 = arith.truncf %33 : vector<2x128xf32> to vector<2x128xbf16>
      %c0_21 = arith.constant 0 : index
      %c0_22 = arith.constant 0 : index
      %35 = vector.load %arg7[%c0_21, %c0_22] : memref<128x128xbf16, #tpu.memory_space<vmem>>, vector<128x128xbf16>
      %cst_23 = arith.constant dense<0.000000e+00> : vector<2x128xf32>
      %36 = tpu.matmul %34, %35, %cst_23 {dimension_numbers = #tpu.dot_dimension_numbers<[1], [0], [0], [1], [0, 0, 1, 1], [], []>} : vector<2x128xbf16>, vector<128x128xbf16>, vector<2x128xf32> -> vector<2x128xf32>
      %c0_24 = arith.constant 0 : index
      %c0_25 = arith.constant 0 : index
      %37 = vector.load %arg8[%c0_24, %c0_25] : memref<1x128xf32, #tpu.memory_space<vmem>>, vector<1x128xf32>
      %38 = vector.broadcast %37 : vector<1x128xf32> to vector<2x128xf32>
      %39 = arith.addf %36, %38 : vector<2x128xf32>
      %40 = tpu.iota {dimensions = array<i32: 1>} : vector<2x128xi32>
      %c20_i32 = arith.constant 20 : i32
      %41 = vector.broadcast %c20_i32 : i32 to vector<2x128xi32>
      %42 = arith.cmpi sge, %40, %41 : vector<2x128xi32>
      %c40_i32 = arith.constant 40 : i32
      %43 = vector.broadcast %c40_i32 : i32 to vector<2x128xi32>
      %44 = arith.cmpi slt, %40, %43 : vector<2x128xi32>
      %45 = arith.andi %42, %44 : vector<2x128xi1>
      %46 = math.exp %39 : vector<2x128xf32>
      %47 = arith.select %45, %46, %39 : vector<2x128xi1>, vector<2x128xf32>
      %c0_26 = arith.constant 0 : index
      %c0_27 = arith.constant 0 : index
      %48 = vector.load %arg9[%c0_26, %c0_27] : memref<2x128xf32, #tpu.memory_space<vmem>>, vector<2x128xf32>
      tpu.vector_store %arg9[%c0_26, %c0_27], %47 {strides = array<i32>} : memref<2x128xf32, #tpu.memory_space<vmem>>, vector<2x128xf32>,
    } else {
    }
    return
  }
  func.func @transform_0(%arg0: i32, %arg1: i32) -> (i32, i32) {
    %c0_i32 = arith.constant 0 : i32
    return %arg0, %arg1 : i32, i32
  }
  func.func @transform_1(%arg0: i32, %arg1: i32) -> (i32, i32) {
    %c0_i32 = arith.constant 0 : i32
    %c0_i32_0 = arith.constant 0 : i32
    return %arg1, %c0_i32 : i32, i32
  }
  func.func @transform_2(%arg0: i32, %arg1: i32) -> (i32, i32) {
    %c0_i32 = arith.constant 0 : i32
    %c0_i32_0 = arith.constant 0 : i32
    %c0_i32_1 = arith.constant 0 : i32
    return %c0_i32, %c0_i32_0 : i32, i32
  }
  func.func @transform_3(%arg0: i32, %arg1: i32) -> (i32, i32) {
    %c0_i32 = arith.constant 0 : i32
    %c0_i32_0 = arith.constant 0 : i32
    %c0_i32_1 = arith.constant 0 : i32
    return %c0_i32, %c0_i32_0 : i32, i32
  }
  func.func @transform_4(%arg0: i32, %arg1: i32) -> (i32, i32) {
    %c0_i32 = arith.constant 0 : i32
    %c0_i32_0 = arith.constant 0 : i32
    %c0_i32_1 = arith.constant 0 : i32
    return %c0_i32, %c0_i32_0 : i32, i32
  }
  func.func @transform_5(%arg0: i32, %arg1: i32) -> (i32, i32) {
    %c0_i32 = arith.constant 0 : i32
    %c0_i32_0 = arith.constant 0 : i32
    %c0_i32_1 = arith.constant 0 : i32
    return %c0_i32, %c0_i32_0 : i32, i32
  }
  func.func @transform_6(%arg0: i32, %arg1: i32) -> (i32, i32) {
    %c0_i32 = arith.constant 0 : i32
    %c0_i32_0 = arith.constant 0 : i32
    %c0_i32_1 = arith.constant 0 : i32
    return %c0_i32, %c0_i32_0 : i32, i32
  }
  func.func @transform_7(%arg0: i32, %arg1: i32) -> (i32, i32) {
    %c0_i32 = arith.constant 0 : i32
    %c0_i32_0 = arith.constant 0 : i32
    return %arg0, %c0_i32 : i32, i32
  }
}

</mosaic_0001>

<bundles_post_ra>
// kernel: tpu_custom_call.1
= control target key start
LH: loop header
LB: loop body
LE: loop exit
PB: predicated region body
PF: predicated region fallthrough
CT: control target
= control target key end

     0   :  { %12 = vsyncpa [#allocation4], 0  ;;  %s2198_s0 = inlined_call_operand.hbm [shape: bf16[2,1024], index: 0, kind: input, shape index: {}]   ;;  %s2199_s1 = inlined_call_operand.hbm [shape: bf16[1024,256], index: 1, kind: input, shape index: {}]   ;;  %s2200_s2 = inlined_call_operand.vmem [shape: f32[1,256], index: 2, kind: input, shape index: {}]   ;;  %s2201_s3 = inlined_call_operand.hbm [shape: bf16[256,128], index: 3, kind: input, shape index: {}]   ;;  %s2202_s4 = inlined_call_operand.vmem [shape: f32[1,128], index: 4, kind: input, shape index: {}]   ;;  %s2203_s5 = inlined_call_operand.hbm [shape: bf16[128,128], index: 5, kind: input, shape index: {}]   ;;  %s2204_s6 = inlined_call_operand.vmem [shape: f32[1,128], index: 6, kind: input, shape index: {}]   ;;  %s2205_s7 = inlined_call_operand.hbm [shape: f32[2,128], index: 7, kind: output, shape index: {}]  }
   0x1   :  { %13 = vsyncpa [#allocation7], 0 }
   0x2   :  { %14 = vsyncpa [#allocation10], 0 }
   0x3   :  { %15 = vsyncpa [#allocation5], 0  ;;  %s2030_s24 = smov [#allocation6]   ;;  %s1912_s28 = scalar_lea.hbm %s2199_s1, 16384 }
   0x4   :  { %s31_s25 = sshll.u32 %s2030_s24, 4  ;;  %p1913_p0 = scmp.ne.s32.totalorder %s2199_s1, %s1912_s28  ;;  %s32_s25 = int_to_ptr.vmem [resolvable:$true] %s31_s25 }
   0x5   :  { %p1916_p1 = scmp.lt.u32.totalorder %s1912_s28, %s2199_s1 }
   0x7   :  { %p1918_p2 = pnand %p1916_p1, %p1913_p0 }
   0x9   :  { %1921 = shalt.err (!%p1918_p2)
}
   0xa   :  { %s1922_s10 = scalar_lea.vmem %s32_s25, 16384  ;;  %p1927_p4 = scmp.lt.s32.totalorder %s32_s25, %s32_s25 }
   0xb   :  { %p1923_p3 = scmp.ne.s32.totalorder %s32_s25, %s1922_s10  ;;  %p1928_p5 = scmp.lt.s32.totalorder %s1922_s10, %s1922_s10 }
   0xd   :  { %p1929_p6 = por %p1928_p5, %p1927_p4 }
   0xf   :  { %p1930_p7 = pnand %p1929_p6, %p1923_p3 }
  0x11   :  { %1933 = shalt.err (!%p1930_p7)
}
  0x12   :  { %s2031_s11 = smov 128   ;;  %s2032_s12 = smov 8  }
  0x13   :  { %37 = dma.hbm_to_vmem [thread:$0]  %s2199_s1, 16384, %s32_s25, [#allocation7], %s2031_s11, %s2031_s11, %s2032_s12  }
  0x14   :  { %s2033_s15 = smov [#allocation3]   ;;  %s2034_s17 = smov [#allocation8]  }
  0x15   :  { %s22_s16 = sshll.u32 %s2033_s15, 4  ;;  %s45_s18 = sshll.u32 %s2034_s17, 4  ;;  %s23_s16 = int_to_ptr.vmem [resolvable:$true] %s22_s16  ;;  %s46_s18 = int_to_ptr.vmem [resolvable:$true] %s45_s18 }
  0x16   :  { %s1934_s21 = scalar_lea.hbm %s2198_s0, 128 }
  0x17   :  { %p1935_p8 = scmp.ne.s32.totalorder %s2198_s0, %s1934_s21  ;;  %p1938_p9 = scmp.lt.u32.totalorder %s1934_s21, %s2198_s0 }
  0x19   :  { %p1940_p10 = pnand %p1938_p9, %p1935_p8 }
  0x1b   :  { %1943 = shalt.err (!%p1940_p10)
}
  0x1c   :  { %s1944_s1 = scalar_lea.vmem %s23_s16, 128  ;;  %p1949_p12 = scmp.lt.s32.totalorder %s23_s16, %s23_s16 }
  0x1d   :  { %p1945_p11 = scmp.ne.s32.totalorder %s23_s16, %s1944_s1  ;;  %p1950_p13 = scmp.lt.s32.totalorder %s1944_s1, %s1944_s1 }
  0x1f   :  { %p1951_p0 = por %p1950_p13, %p1949_p12 }
  0x21   :  { %p1952_p1 = pnand %p1951_p0, %p1945_p11 }
  0x23   :  { %1955 = shalt.err (!%p1952_p1)
}
  0x24   :  { %25 = dma.hbm_to_vmem [thread:$0]  %s2198_s0, 128, %s23_s16, [#allocation4]  }
  0x25   :  { %s1956_s30 = scalar_lea.hbm %s2201_s3, 2048 }
  0x26   :  { %p1957_p2 = scmp.ne.s32.totalorder %s2201_s3, %s1956_s30  ;;  %p1960_p3 = scmp.lt.u32.totalorder %s1956_s30, %s2201_s3 }
  0x28   :  { %p1962_p4 = pnand %p1960_p3, %p1957_p2 }
  0x2a   :  { %1965 = shalt.err (!%p1962_p4)
}
  0x2b   :  { %s1966_s12 = scalar_lea.vmem %s46_s18, 2048  ;;  %p1971_p6 = scmp.lt.s32.totalorder %s46_s18, %s46_s18 }
  0x2c   :  { %p1967_p5 = scmp.ne.s32.totalorder %s46_s18, %s1966_s12  ;;  %p1972_p7 = scmp.lt.s32.totalorder %s1966_s12, %s1966_s12 }
  0x2e   :  { %p1973_p8 = por %p1972_p7, %p1971_p6 }
  0x30   :  { %p1974_p9 = pnand %p1973_p8, %p1967_p5 }
  0x32   :  { %1977 = shalt.err (!%p1974_p9)
}
  0x33   :  { %s2035_s0 = smov 64   ;;  %s2036_s13 = smov 4  }
  0x34   :  { %51 = dma.hbm_to_vmem [thread:$0]  %s2201_s3, 2048, %s46_s18, [#allocation7], %s2035_s0, %s2035_s0, %s2036_s13  }
  0x35   :  { %s2037_s16 = smov [#allocation9]   ;;  %s1978_s21 = scalar_lea.hbm %s2203_s5, 1024 }
  0x36   :  { %s59_s17 = sshll.u32 %s2037_s16, 4  ;;  %p1979_p10 = scmp.ne.s32.totalorder %s2203_s5, %s1978_s21  ;;  %s60_s17 = int_to_ptr.vmem [resolvable:$true] %s59_s17 }
  0x37   :  { %p1982_p11 = scmp.lt.u32.totalorder %s1978_s21, %s2203_s5 }
  0x39   :  { %p1984_p12 = pnand %p1982_p11, %p1979_p10 }
  0x3b   :  { %1987 = shalt.err (!%p1984_p12)
}
  0x3c   :  { %s1988_s1 = scalar_lea.vmem %s60_s17, 1024  ;;  %p1993_p0 = scmp.lt.s32.totalorder %s60_s17, %s60_s17 }
  0x3d   :  { %p1989_p13 = scmp.ne.s32.totalorder %s60_s17, %s1988_s1  ;;  %p1994_p1 = scmp.lt.s32.totalorder %s1988_s1, %s1988_s1 }
  0x3f   :  { %p1995_p2 = por %p1994_p1, %p1993_p0 }
  0x41   :  { %p1996_p3 = pnand %p1995_p2, %p1989_p13 }
  0x43   :  { %1999 = shalt.err (!%p1996_p3)
}
  0x44   :  { %65 = dma.hbm_to_vmem [thread:$0]  %s2203_s5, 1024, %s60_s17, [#allocation10], %s2035_s0, %s2035_s0, %s2036_s13  }
  0x45   :  { %2022 = dma.done.wait [#allocation4], 128  }
  0x46   :  { %2023 = vsyncadd [#allocation4], 4294967168 }
  0x47   :  { %2024 = dma.done.wait [#allocation7], 18432  }
  0x48   :  { %2025 = vsyncadd [#allocation7], 4294948864 }
  0x49   :  { %2026 = dma.done.wait [#allocation10], 1024  }
  0x4a   :  { %2027 = vsyncadd [#allocation10], 4294966272  ;;  %v1685_v0 = vld [vmem:[#allocation6 + $0x104] ss:$8 sps:$4 sm:$0xff]   ;;  %v1687_v1 = vld [vmem:[#allocation6 + $0x100] ss:$8 sps:$4 sm:$0xff]   ;;  %v221_v9 = vlaneseq }
  0x4b   :  { %955 = vmatprep.subr.bf16.mxu0 %v1685_v0  ;;  %v1688_v2 = vld [vmem:[#allocation6 + $0x114] ss:$8 sps:$4 sm:$0xff]   ;;  %v1690_v3 = vld [vmem:[#allocation6 + $0x110] ss:$8 sps:$4 sm:$0xff]   ;;  %v1691_v4 = vld [vmem:[#allocation6 + $0x124] ss:$8 sps:$4 sm:$0xff]  }
  0x4c   :  { %956 = vmatpush1.bf16.msra.mxu0 %v1687_v1  ;;  %v1693_v5 = vld [vmem:[#allocation6 + $0x120] ss:$8 sps:$4 sm:$0xff]   ;;  %v1694_v6 = vld [vmem:[#allocation6 + $0x134] ss:$8 sps:$4 sm:$0xff]   ;;  %v2038_v7 = vmov 1966171168  }
  0x4d   :  { %957 = vmatprep.subr.bf16.mxu0 %v1688_v2  ;;  %v219_v8 = vunpack.c.l.s4 %v2038_v7  ;;  %v1696_v10 = vld [vmem:[#allocation6 + $0x130] ss:$8 sps:$4 sm:$0xff]   ;;  %v1697_v11 = vld [vmem:[#allocation6 + $0x144] ss:$8 sps:$4 sm:$0xff]   ;;  %v2132_v13 = vshrl.u32 %v221_v9, 7  ;;  %vm2041_vm0 = vmmov 0  }
  0x4e   :  { %v1699_v14 = vld [vmem:[#allocation6 + $0x140] ss:$8 sps:$4 sm:$0xff]   ;;  %v1700_v15 = vld [vmem:[#allocation6 + $0x154] ss:$8 sps:$4 sm:$0xff]   ;;  %v1702_v17 = vld [vmem:[#allocation6 + $0x150] ss:$8 sps:$4 sm:$0xff]  }
  0x4f   :  { %v220_v12 = vunpack.c.0.s8 %v219_v8  ;;  %v1703_v18 = vld [vmem:[#allocation6 + $0x164] ss:$8 sps:$4 sm:$0xff]   ;;  %v87_v19 = vld [vmem:[#allocation3] sm:$0xff]  ;;  %v1705_v22 = vld [vmem:[#allocation6 + $0x160] ss:$8 sps:$4 sm:$0xff]  }
  0x50   :  { %958 = vmatpush1.bf16.msra.mxu0 %v1690_v3  ;;  %v217_v20 = vcombine.high %v87_v19, %v87_v19  ;;  %v1706_v23 = vld [vmem:[#allocation6 + $0x174] ss:$8 sps:$4 sm:$0xff]   ;;  %v1708_v28 = vld [vmem:[#allocation6 + $0x170] ss:$8 sps:$4 sm:$0xff]   ;;  %v1709_v29 = vld [vmem:[#allocation6 + $0x184] ss:$8 sps:$4 sm:$0xff]  }
  0x51   :  { %959 = vmatprep.subr.bf16.mxu0 %v1691_v4  ;;  %v2135_v16 = vsub.s32 %v220_v12, %v2132_v13  ;;  %v1711_v31 = vld [vmem:[#allocation6 + $0x180] ss:$8 sps:$4 sm:$0xff]   ;;  %v1712_v32 = vld [vmem:[#allocation6 + $0x194] ss:$8 sps:$4 sm:$0xff]   ;;  %v1714_v33 = vld [vmem:[#allocation6 + $0x190] ss:$8 sps:$4 sm:$0xff]  }
  0x52   :  { %v1715_v34 = vld [vmem:[#allocation6 + $0x1a4] ss:$8 sps:$4 sm:$0xff]   ;;  %v1717_v35 = vld [vmem:[#allocation6 + $0x1a0] ss:$8 sps:$4 sm:$0xff]   ;;  %v1718_v36 = vld [vmem:[#allocation6 + $0x1b4] ss:$8 sps:$4 sm:$0xff]  }
  0x53   :  { %v224_v21 = vrot.slane %v87_v19, %v2135_v16  ;;  %v2139_v25 = vrot.slane %v217_v20, %v2135_v16  ;;  %v1720_v37 = vld [vmem:[#allocation6 + $0x1b0] ss:$8 sps:$4 sm:$0xff]   ;;  %v1721_v38 = vld [vmem:[#allocation6 + $0x1c4] ss:$8 sps:$4 sm:$0xff]   ;;  %v1784_v40 = vld [vmem:[#allocation6] ss:$8 sps:$4 sm:$0xff]  }
  0x54   :  { %960 = vmatpush1.bf16.msra.mxu0 %v1693_v5  ;;  %v1782_v39 = vld [vmem:[#allocation6 + $0x4] ss:$8 sps:$4 sm:$0xff]   ;;  %v1788_v41 = vld [vmem:[#allocation6 + $0x14] ss:$8 sps:$4 sm:$0xff]   ;;  %v1790_v42 = vld [vmem:[#allocation6 + $0x10] ss:$8 sps:$4 sm:$0xff]  }
  0x55   :  { %961 = vmatprep.subr.bf16.mxu0 %v1694_v6  ;;  %v232_v24 = vcombine.high %v224_v21, %v224_v21  ;;  %v2144_v27 = vrot.slane %v2139_v25, %v2135_v16  ;;  %914 = vmatprep.subr.bf16.mxu1 %v1782_v39  ;;  %v1723_v43 = vld [vmem:[#allocation6 + $0x1c0] ss:$8 sps:$4 sm:$0xff]   ;;  %v1724_v44 = vld [vmem:[#allocation6 + $0x1d4] ss:$8 sps:$4 sm:$0xff]   ;;  %v1794_v45 = vld [vmem:[#allocation6 + $0x24] ss:$8 sps:$4 sm:$0xff]   ;;  %v2147_v55 = vrot.slane %v224_v21, %v2135_v16 }
  0x56   :  { %915 = vmatpush1.bf16.msra.mxu1 %v1784_v40  ;;  %v1726_v46 = vld [vmem:[#allocation6 + $0x1d0] ss:$8 sps:$4 sm:$0xff]   ;;  %v1796_v47 = vld [vmem:[#allocation6 + $0x20] ss:$8 sps:$4 sm:$0xff]   ;;  %v1800_v48 = vld [vmem:[#allocation6 + $0x34] ss:$8 sps:$4 sm:$0xff]   ;;  %v233_v57 = vcombine.high %v2139_v25, %v2139_v25 }
  0x57   :  { %v254_v26 = vrot.slane %v232_v24, %v2135_v16  ;;  %916 = vmatprep.subr.bf16.mxu1 %v1788_v41  ;;  %v1727_v49 = vld [vmem:[#allocation6 + $0x1e4] ss:$8 sps:$4 sm:$0xff]   ;;  %v1729_v50 = vld [vmem:[#allocation6 + $0x1e0] ss:$8 sps:$4 sm:$0xff]   ;;  %v1802_v51 = vld [vmem:[#allocation6 + $0x30] ss:$8 sps:$4 sm:$0xff]   ;;  %v262_v61 = vcombine.high %v2147_v55, %v2147_v55 }
  0x58   :  { %962 = vmatpush1.bf16.msra.mxu0 %v1696_v10  ;;  %v1806_v52 = vld [vmem:[#allocation6 + $0x44] ss:$8 sps:$4 sm:$0xff]   ;;  %v1730_v53 = vld [vmem:[#allocation6 + $0x1f4] ss:$8 sps:$4 sm:$0xff]   ;;  %v1732_v54 = vld [vmem:[#allocation6 + $0x1f0] ss:$8 sps:$4 sm:$0xff]   ;;  %v2154_v0 = vrot.slane %v233_v57, %v2135_v16 }
  0x59   :  { %963 = vmatprep.subr.bf16.mxu0 %v1697_v11  ;;  %v264_v30 = vcombine.high %v254_v26, %v254_v26  ;;  %946 = vmatprep.mubr.bf16.mxu1 %v254_v26  ;;  %v1808_v56 = vld [vmem:[#allocation6 + $0x40] ss:$8 sps:$4 sm:$0xff]   ;;  %v1812_v58 = vld [vmem:[#allocation6 + $0x54] ss:$8 sps:$4 sm:$0xff]   ;;  %v1736_v59 = vld [vmem:[#allocation6 + $0x204] ss:$8 sps:$4 sm:$0xff]  }
  0x5a   :  { %917 = vmatpush1.bf16.msra.mxu1 %v1790_v42  ;;  %v1734_v60 = vld [vmem:[#allocation6 + $0x200] ss:$8 sps:$4 sm:$0xff]   ;;  %v1814_v62 = vld [vmem:[#allocation6 + $0x50] ss:$8 sps:$4 sm:$0xff]   ;;  %v1739_v63 = vld [vmem:[#allocation6 + $0x214] ss:$8 sps:$4 sm:$0xff]  }
  0x5b   :  { %987 = vmatprep.mubr.bf16.mxu0 %v264_v30  ;;  %918 = vmatprep.subr.bf16.mxu1 %v1794_v45  ;;  %v1818_v1 = vld [vmem:[#allocation6 + $0x64] ss:$8 sps:$4 sm:$0xff]   ;;  %v1737_v2 = vld [vmem:[#allocation6 + $0x210] ss:$8 sps:$4 sm:$0xff]   ;;  %v1820_v3 = vld [vmem:[#allocation6 + $0x60] ss:$8 sps:$4 sm:$0xff]  }
  0x5c   :  { %964 = vmatpush1.bf16.msra.mxu0 %v1699_v14  ;;  %v1824_v4 = vld [vmem:[#allocation6 + $0x74] ss:$8 sps:$4 sm:$0xff]   ;;  %v1742_v5 = vld [vmem:[#allocation6 + $0x224] ss:$8 sps:$4 sm:$0xff]   ;;  %v1740_v6 = vld [vmem:[#allocation6 + $0x220] ss:$8 sps:$4 sm:$0xff]  }
  0x5d   :  { %965 = vmatprep.subr.bf16.mxu0 %v1700_v15  ;;  %v1826_v7 = vld [vmem:[#allocation6 + $0x70] ss:$8 sps:$4 sm:$0xff]   ;;  %v1830_v8 = vld [vmem:[#allocation6 + $0x84] ss:$8 sps:$4 sm:$0xff]   ;;  %v1745_v10 = vld [vmem:[#allocation6 + $0x234] ss:$8 sps:$4 sm:$0xff]  }
  0x5e   :  { %919 = vmatpush1.bf16.msra.mxu1 %v1796_v47  ;;  %v1743_v11 = vld [vmem:[#allocation6 + $0x230] ss:$8 sps:$4 sm:$0xff]   ;;  %v1832_v12 = vld [vmem:[#allocation6 + $0x80] ss:$8 sps:$4 sm:$0xff]   ;;  %v1836_v14 = vld [vmem:[#allocation6 + $0x94] ss:$8 sps:$4 sm:$0xff]  }
  0x5f   :  { %920 = vmatprep.subr.bf16.mxu1 %v1800_v48  ;;  %v1748_v15 = vld [vmem:[#allocation6 + $0x244] ss:$8 sps:$4 sm:$0xff]   ;;  %v1746_v16 = vld [vmem:[#allocation6 + $0x240] ss:$8 sps:$4 sm:$0xff]   ;;  %v1751_v19 = vld [vmem:[#allocation6 + $0x254] ss:$8 sps:$4 sm:$0xff]  }
  0x60   :  { %966 = vmatpush1.bf16.msra.mxu0 %v1702_v17  ;;  %v1838_v17 = vld [vmem:[#allocation6 + $0x90] ss:$8 sps:$4 sm:$0xff]   ;;  %v1844_v21 = vld [vmem:[#allocation6 + $0xa0] ss:$8 sps:$4 sm:$0xff]   ;;  %v1854_v26 = vld [vmem:[#allocation6 + $0xc4] ss:$8 sps:$4 sm:$0xff]  }
  0x61   :  { %967 = vmatprep.subr.bf16.mxu0 %v1703_v18  ;;  %v1842_v18 = vld [vmem:[#allocation6 + $0xa4] ss:$8 sps:$4 sm:$0xff]   ;;  %v1749_v20 = vld [vmem:[#allocation6 + $0x250] ss:$8 sps:$4 sm:$0xff]   ;;  %v1752_v24 = vld [vmem:[#allocation6 + $0x260] ss:$8 sps:$4 sm:$0xff]  }
  0x62   :  { %921 = vmatpush1.bf16.msra.mxu1 %v1802_v51  ;;  %v1850_v25 = vld [vmem:[#allocation6 + $0xb0] ss:$8 sps:$4 sm:$0xff]   ;;  %v1872_v39 = vld [vmem:[#allocation6 + $0xf4] ss:$8 sps:$4 sm:$0xff]   ;;  %v1766_v40 = vld [vmem:[#allocation6 + $0x2a4] ss:$8 sps:$4 sm:$0xff]  }
  0x63   :  { %922 = vmatprep.subr.bf16.mxu1 %v1806_v52  ;;  %v1755_v30 = vld [vmem:[#allocation6 + $0x270] ss:$8 sps:$4 sm:$0xff]   ;;  %v1764_v42 = vld [vmem:[#allocation6 + $0x2a0] ss:$8 sps:$4 sm:$0xff]   ;;  %v1772_v45 = vld [vmem:[#allocation6 + $0x2c4] ss:$8 sps:$4 sm:$0xff]  }
  0x64   :  { %968 = vmatpush1.bf16.msra.mxu0 %v1705_v22  ;;  %v1848_v22 = vld [vmem:[#allocation6 + $0xb4] ss:$8 sps:$4 sm:$0xff]   ;;  %v1874_v41 = vld [vmem:[#allocation6 + $0xf0] ss:$8 sps:$4 sm:$0xff]  }
  0x65   :  { %969 = vmatprep.subr.bf16.mxu0 %v1706_v23  ;;  %v1754_v23 = vld [vmem:[#allocation6 + $0x264] ss:$8 sps:$4 sm:$0xff]   ;;  %v1775_v47 = vld [vmem:[#allocation6 + $0x2d4] ss:$8 sps:$4 sm:$0xff]   ;;  %v1773_v48 = vld [vmem:[#allocation6 + $0x2d0] ss:$8 sps:$4 sm:$0xff]  }
  0x66   :  { %923 = vmatpush1.bf16.msra.mxu1 %v1808_v56  ;;  %v1781_v51 = vld [vmem:[#allocation6 + $0x2f4] ss:$8 sps:$4 sm:$0xff]   ;;  %v1779_v52 = vld [vmem:[#allocation6 + $0x2f0] ss:$8 sps:$4 sm:$0xff]  }
  0x67   :  { %924 = vmatprep.subr.bf16.mxu1 %v1812_v58  ;;  %v1793_v56 = vld [vmem:[#allocation6 + $0x314] ss:$8 sps:$4 sm:$0xff]   ;;  %v1791_v57 = vld [vmem:[#allocation6 + $0x310] ss:$8 sps:$4 sm:$0xff]   ;;  %v1799_v58 = vld [vmem:[#allocation6 + $0x324] ss:$8 sps:$4 sm:$0xff]  }
  0x68   :  { %970 = vmatpush1.bf16.msra.mxu0 %v1708_v28  ;;  %v1757_v28 = vld [vmem:[#allocation6 + $0x274] ss:$8 sps:$4 sm:$0xff]  }
  0x69   :  { %971 = vmatprep.subr.bf16.mxu0 %v1709_v29  ;;  %v1856_v29 = vld [vmem:[#allocation6 + $0xc0] ss:$8 sps:$4 sm:$0xff]  }
  0x6a   :  { %925 = vmatpush1.bf16.msra.mxu1 %v1814_v62  ;;  %v1811_v62 = vld [vmem:[#allocation6 + $0x344] ss:$8 sps:$4 sm:$0xff]  }
  0x6b   :  { %926 = vmatprep.subr.bf16.mxu1 %v1818_v1  ;;  %v1815_v1 = vld [vmem:[#allocation6 + $0x350] ss:$8 sps:$4 sm:$0xff]  }
  0x6c   :  { %972 = vmatpush1.bf16.msra.mxu0 %v1711_v31  ;;  %v1860_v31 = vld [vmem:[#allocation6 + $0xd4] ss:$8 sps:$4 sm:$0xff]  }
  0x6d   :  { %973 = vmatprep.subr.bf16.mxu0 %v1712_v32  ;;  %v1760_v32 = vld [vmem:[#allocation6 + $0x284] ss:$8 sps:$4 sm:$0xff]  }
  0x6e   :  { %927 = vmatpush1.bf16.msra.mxu1 %v1820_v3  ;;  %v1821_v3 = vld [vmem:[#allocation6 + $0x360] ss:$8 sps:$4 sm:$0xff]  }
  0x6f   :  { %928 = vmatprep.subr.bf16.mxu1 %v1824_v4  ;;  %v1829_v4 = vld [vmem:[#allocation6 + $0x374] ss:$8 sps:$4 sm:$0xff]  }
  0x70   :  { %974 = vmatpush1.bf16.msra.mxu0 %v1714_v33  ;;  %v1862_v33 = vld [vmem:[#allocation6 + $0xd0] ss:$8 sps:$4 sm:$0xff]  }
  0x71   :  { %975 = vmatprep.subr.bf16.mxu0 %v1715_v34  ;;  %v1758_v34 = vld [vmem:[#allocation6 + $0x280] ss:$8 sps:$4 sm:$0xff]  }
  0x72   :  { %929 = vmatpush1.bf16.msra.mxu1 %v1826_v7  ;;  %v1833_v7 = vld [vmem:[#allocation6 + $0x380] ss:$8 sps:$4 sm:$0xff]  }
  0x73   :  { %930 = vmatprep.subr.bf16.mxu1 %v1830_v8  ;;  %v1841_v8 = vld [vmem:[#allocation6 + $0x394] ss:$8 sps:$4 sm:$0xff]  }
  0x74   :  { %976 = vmatpush1.bf16.msra.mxu0 %v1717_v35  ;;  %v1866_v35 = vld [vmem:[#allocation6 + $0xe4] ss:$8 sps:$4 sm:$0xff]  }
  0x75   :  { %977 = vmatprep.subr.bf16.mxu0 %v1718_v36  ;;  %v1763_v36 = vld [vmem:[#allocation6 + $0x294] ss:$8 sps:$4 sm:$0xff]  }
  0x76   :  { %931 = vmatpush1.bf16.msra.mxu1 %v1832_v12  ;;  %v1845_v12 = vld [vmem:[#allocation6 + $0x3a0] ss:$8 sps:$4 sm:$0xff]  }
  0x77   :  { %932 = vmatprep.subr.bf16.mxu1 %v1836_v14  ;;  %v1853_v14 = vld [vmem:[#allocation6 + $0x3b4] ss:$8 sps:$4 sm:$0xff]  }
  0x78   :  { %978 = vmatpush1.bf16.msra.mxu0 %v1720_v37  ;;  %v1868_v37 = vld [vmem:[#allocation6 + $0xe0] ss:$8 sps:$4 sm:$0xff]  }
  0x79   :  { %979 = vmatprep.subr.bf16.mxu0 %v1721_v38  ;;  %v1761_v38 = vld [vmem:[#allocation6 + $0x290] ss:$8 sps:$4 sm:$0xff]  }
  0x7a   :  { %933 = vmatpush1.bf16.msra.mxu1 %v1838_v17  ;;  %v1857_v17 = vld [vmem:[#allocation6 + $0x3c0] ss:$8 sps:$4 sm:$0xff]  }
  0x7b   :  { %934 = vmatprep.subr.bf16.mxu1 %v1842_v18  ;;  %v1865_v18 = vld [vmem:[#allocation6 + $0x3d4] ss:$8 sps:$4 sm:$0xff]  }
  0x7c   :  { %980 = vmatpush1.bf16.msra.mxu0 %v1723_v43  ;;  %v1769_v43 = vld [vmem:[#allocation6 + $0x2b4] ss:$8 sps:$4 sm:$0xff]  }
  0x7d   :  { %981 = vmatprep.subr.bf16.mxu0 %v1724_v44  ;;  %v1767_v44 = vld [vmem:[#allocation6 + $0x2b0] ss:$8 sps:$4 sm:$0xff]  }
  0x7e   :  { %935 = vmatpush1.bf16.msra.mxu1 %v1844_v21  ;;  %v1869_v21 = vld [vmem:[#allocation6 + $0x3e0] ss:$8 sps:$4 sm:$0xff]  }
  0x7f   :  { %936 = vmatprep.subr.bf16.mxu1 %v1848_v22  ;;  %v1877_v22 = vld [vmem:[#allocation6 + $0x3f4] ss:$8 sps:$4 sm:$0xff]  }
  0x80   :  { %982 = vmatpush1.bf16.msra.mxu0 %v1726_v46  ;;  %v1770_v46 = vld [vmem:[#allocation6 + $0x2c0] ss:$8 sps:$4 sm:$0xff]  }
  0x81   :  { %983 = vmatprep.subr.bf16.mxu0 %v1727_v49  ;;  %v1778_v49 = vld [vmem:[#allocation6 + $0x2e4] ss:$8 sps:$4 sm:$0xff]  }
  0x82   :  { %937 = vmatpush1.bf16.msra.mxu1 %v1850_v25  ;;  %v2039_v25 = vmov 0.0  }
  0x83   :  { %938 = vmatprep.subr.bf16.mxu1 %v1854_v26  ;;  %85 = vst [vmem:[#allocation2] sm:$0xf] %v2039_v25  ;;  %v1878_v26 = vld [vmem:[#allocation8 + $0x40] sm:$0xff]  }
  0x84   :  { %984 = vmatpush1.bf16.msra.mxu0 %v1729_v50  ;;  %v1776_v50 = vld [vmem:[#allocation6 + $0x2e0] ss:$8 sps:$4 sm:$0xff]  }
  0x85   :  { %985 = vmatprep.subr.bf16.mxu0 %v1730_v53  ;;  %v1787_v53 = vld [vmem:[#allocation6 + $0x304] ss:$8 sps:$4 sm:$0xff]  }
  0x86   :  { %939 = vmatpush1.bf16.msra.mxu1 %v1856_v29  ;;  %v1880_v29 = vld [vmem:[#allocation8 + $0x48] sm:$0xff]  }
  0x87   :  { %940 = vmatprep.subr.bf16.mxu1 %v1860_v31  ;;  %v1882_v31 = vld [vmem:[#allocation8 + $0x50] sm:$0xff]  }
  0x88   :  { %986 = vmatpush1.bf16.msra.mxu0 %v1732_v54  ;;  %v1785_v54 = vld [vmem:[#allocation6 + $0x300] ss:$8 sps:$4 sm:$0xff]  }
  0x89   :  { %996 = vmatprep.subr.bf16.mxu0 %v1736_v59  ;;  %v1797_v59 = vld [vmem:[#allocation6 + $0x320] ss:$8 sps:$4 sm:$0xff]  }
  0x8a   :  { %941 = vmatpush1.bf16.msra.mxu1 %v1862_v33  ;;  %v1884_v33 = vld [vmem:[#allocation8 + $0x58] sm:$0xff]  }
  0x8b   :  { %988 = vmatmul.mubr.bf16.vlgmr.msra.gmra.mrb[0].mxu0 %v262_v61  ;;  %942 = vmatprep.subr.bf16.mxu1 %v1866_v35  ;;  %v1803_v61 = vld [vmem:[#allocation6 + $0x330] ss:$8 sps:$4 sm:$0xff]   ;;  %v1887_v35 = vld [vmem:[#allocation8 + $0x20] sm:$0xff]  }
  0x8c   :  { %997 = vmatpush1.bf16.msra.mxu0 %v1734_v60  ;;  %1028 = vmatprep.mubr.bf16.mxu0 %v2154_v0  ;;  %v1805_v60 = vld [vmem:[#allocation6 + $0x334] ss:$8 sps:$4 sm:$0xff]  }
  0x8d   :  { %998 = vmatprep.subr.bf16.mxu0 %v1739_v63  ;;  %v1809_v63 = vld [vmem:[#allocation6 + $0x340] ss:$8 sps:$4 sm:$0xff]  }
  0x8e   :  { %943 = vmatpush1.bf16.msra.mxu1 %v1868_v37  ;;  %v1889_v37 = vld [vmem:[#allocation8 + $0x28] sm:$0xff]  }
  0x8f   :  { %944 = vmatprep.subr.bf16.mxu1 %v1872_v39  ;;  %v1891_v39 = vld [vmem:[#allocation8 + $0x30] sm:$0xff]  }
  0x90   :  { %999 = vmatpush1.bf16.msra.mxu0 %v1737_v2  ;;  %v1823_v2 = vld [vmem:[#allocation6 + $0x364] ss:$8 sps:$4 sm:$0xff]  }
  0x91   :  { %1000 = vmatprep.subr.bf16.mxu0 %v1742_v5  ;;  %v1827_v5 = vld [vmem:[#allocation6 + $0x370] ss:$8 sps:$4 sm:$0xff]  }
  0x92   :  { %945 = vmatpush1.bf16.msra.mxu1 %v1874_v41  ;;  %v1893_v41 = vld [vmem:[#allocation8 + $0x38] sm:$0xff]  }
  0x93   :  { %1611 = vmatprep.subr.bf16.mxu1 %v1878_v26 }
  0x94   :  { %1001 = vmatpush1.bf16.msra.mxu0 %v1740_v6  ;;  %v1835_v6 = vld [vmem:[#allocation6 + $0x384] ss:$8 sps:$4 sm:$0xff]  }
  0x95   :  { %1002 = vmatprep.subr.bf16.mxu0 %v1745_v10  ;;  %947 = vmatmul.mubr.bf16.vlgmr.msra.gmra.mrb[0].mxu1 %v2147_v55  ;;  %v265_v55 = vcombine.high %v2154_v0, %v2154_v0  ;;  %v1817_v0 = vld [vmem:[#allocation6 + $0x354] ss:$8 sps:$4 sm:$0xff]   ;;  %v1839_v10 = vld [vmem:[#allocation6 + $0x390] ss:$8 sps:$4 sm:$0xff]  }
  0x98   :  { %1003 = vmatpush1.bf16.msra.mxu0 %v1743_v11  ;;  %v1847_v11 = vld [vmem:[#allocation6 + $0x3a4] ss:$8 sps:$4 sm:$0xff]  }
  0x99   :  { %1004 = vmatprep.subr.bf16.mxu0 %v1748_v15  ;;  %v1851_v15 = vld [vmem:[#allocation6 + $0x3b0] ss:$8 sps:$4 sm:$0xff]  }
  0x9c   :  { %1005 = vmatpush1.bf16.msra.mxu0 %v1746_v16  ;;  %v1859_v16 = vld [vmem:[#allocation6 + $0x3c4] ss:$8 sps:$4 sm:$0xff]  }
  0x9d   :  { %1006 = vmatprep.subr.bf16.mxu0 %v1751_v19  ;;  %v1863_v19 = vld [vmem:[#allocation6 + $0x3d0] ss:$8 sps:$4 sm:$0xff]  }
  0xa0   :  { %1007 = vmatpush1.bf16.msra.mxu0 %v1749_v20  ;;  %v1871_v20 = vld [vmem:[#allocation6 + $0x3e4] ss:$8 sps:$4 sm:$0xff]  }
  0xa1   :  { %1008 = vmatprep.subr.bf16.mxu0 %v1754_v23  ;;  %v1875_v23 = vld [vmem:[#allocation6 + $0x3f0] ss:$8 sps:$4 sm:$0xff]  }
  0xa4   :  { %1009 = vmatpush1.bf16.msra.mxu0 %v1752_v24  ;;  %v263_v24 = vcombine.high %v2144_v27, %v2144_v27 }
  0xa5   :  { %1010 = vmatprep.subr.bf16.mxu0 %v1757_v28  ;;  %v1879_v28 = vld [vmem:[#allocation8] sm:$0xff]  }
  0xa6   :  { %1612 = vmatpush3.bf16.msra.mxu1 %v1879_v28 }
  0xa7   :  { %1613 = vmatprep.subr.bf16.mxu1 %v1880_v29 }
  0xa8   :  { %1011 = vmatpush1.bf16.msra.mxu0 %v1755_v30  ;;  %v1881_v30 = vld [vmem:[#allocation8 + $0x8] sm:$0xff]  }
  0xa9   :  { %1012 = vmatprep.subr.bf16.mxu0 %v1760_v32  ;;  %v1883_v32 = vld [vmem:[#allocation8 + $0x10] sm:$0xff]  }
  0xaa   :  { %1614 = vmatpush3.bf16.msra.mxu1 %v1881_v30 }
  0xab   :  { %1615 = vmatprep.subr.bf16.mxu1 %v1882_v31 }
  0xac   :  { %1013 = vmatpush1.bf16.msra.mxu0 %v1758_v34  ;;  %v1885_v34 = vld [vmem:[#allocation8 + $0x18] sm:$0xff]  }
  0xad   :  { %1014 = vmatprep.subr.bf16.mxu0 %v1763_v36  ;;  %v1888_v36 = vld [vmem:[#allocation8 + $0x68] sm:$0xff]  }
  0xae   :  { %1616 = vmatpush3.bf16.msra.mxu1 %v1883_v32 }
  0xaf   :  { %1617 = vmatprep.subr.bf16.mxu1 %v1884_v33 }
  0xb0   :  { %1015 = vmatpush1.bf16.msra.mxu0 %v1761_v38  ;;  %v1890_v38 = vld [vmem:[#allocation8 + $0x70] sm:$0xff]  }
  0xb1   :  { %1016 = vmatprep.subr.bf16.mxu0 %v1766_v40  ;;  %v1892_v40 = vld [vmem:[#allocation8 + $0x78] sm:$0xff]  }
  0xb2   :  { %1618 = vmatpush3.bf16.msra.mxu1 %v1885_v34 }
  0xb4   :  { %1017 = vmatpush1.bf16.msra.mxu0 %v1764_v42 }
  0xb5   :  { %1018 = vmatprep.subr.bf16.mxu0 %v1769_v43 }
  0xb8   :  { %1019 = vmatpush1.bf16.msra.mxu0 %v1767_v44 }
  0xb9   :  { %1020 = vmatprep.subr.bf16.mxu0 %v1772_v45 }
  0xbc   :  { %1021 = vmatpush1.bf16.msra.mxu0 %v1770_v46  ;;  %v2040_v46 = vmov 1983009808  }
  0xbd   :  { %1022 = vmatprep.subr.bf16.mxu0 %v1775_v47  ;;  %v1082_v47 = vunpack.c.l.s4 %v2040_v46 }
  0xc0   :  { %1023 = vmatpush1.bf16.msra.mxu0 %v1773_v48  ;;  %v1083_v48 = vunpack.c.0.s8 %v1082_v47 }
  0xc1   :  { %1024 = vmatprep.subr.bf16.mxu0 %v1778_v49 }
  0xc4   :  { %1025 = vmatpush1.bf16.msra.mxu0 %v1776_v50 }
  0xc5   :  { %1026 = vmatprep.subr.bf16.mxu0 %v1781_v51 }
  0xc8   :  { %1027 = vmatpush1.bf16.msra.mxu0 %v1779_v52 }
  0xc9   :  { %1037 = vmatprep.subr.bf16.mxu0 %v1787_v53  ;;  %v1086_v53 = vsub.s32 %v1083_v48, %v2132_v13 }
  0xcb   :  { %1029 = vmatmul.mubr.bf16.vlgmr.msra.gmra.mrb[0].mxu0 %v2144_v27  ;;  %v1886_v27 = vld [vmem:[#allocation8 + $0x60] sm:$0xff]  }
  0xcc   :  { %1038 = vmatpush1.bf16.msra.mxu0 %v1785_v54  ;;  %1069 = vmatprep.mubr.bf16.mxu0 %v265_v55  ;;  %v1099_v55 = vsub.s32 0, %v2132_v13 }
  0xcd   :  { %1039 = vmatprep.subr.bf16.mxu0 %v1793_v56  ;;  %1619 = vmatprep.subr.bf16.mxu1 %v1886_v27  ;;  %v1103_v56 = vsub.s32 1, %v2132_v13 }
  0xce   :  { %1620 = vmatpush3.bf16.msra.mxu1 %v1887_v35 }
  0xcf   :  { %1621 = vmatprep.subr.bf16.mxu1 %v1888_v36 }
  0xd0   :  { %1040 = vmatpush1.bf16.msra.mxu0 %v1791_v57 }
  0xd1   :  { %1041 = vmatprep.subr.bf16.mxu0 %v1799_v58  ;;  %v1095_v58 = vld [vmem:[%s2200_s2] sm:$0x3] }
  0xd2   :  { %1622 = vmatpush3.bf16.msra.mxu1 %v1889_v37 }
  0xd3   :  { %1623 = vmatprep.subr.bf16.mxu1 %v1890_v38 }
  0xd4   :  { %1042 = vmatpush1.bf16.msra.mxu0 %v1797_v59 }
  0xd5   :  { %1043 = vmatprep.subr.bf16.mxu0 %v1805_v60  ;;  %v86_v60 = vld [vmem:[#allocation2] sm:$0xf] }
  0xd6   :  { %1624 = vmatpush3.bf16.msra.mxu1 %v1891_v39 }
  0xd7   :  { %1625 = vmatprep.subr.bf16.mxu1 %v1892_v40 }
  0xd8   :  { %1044 = vmatpush1.bf16.msra.mxu0 %v1803_v61 }
  0xd9   :  { %1045 = vmatprep.subr.bf16.mxu0 %v1811_v62  ;;  %v1100_v62 = vrot.slane %v1095_v58, %v1099_v55 }
  0xda   :  { %1626 = vmatpush3.bf16.msra.mxu1 %v1893_v41 }
  0xdb   :  { %1642 = vmatprep.subr.bf16.mxu1 %v2039_v25 }
  0xdc   :  { %1046 = vmatpush1.bf16.msra.mxu0 %v1809_v63  ;;  %v1104_v63 = vrot.slane %v1095_v58, %v1103_v56 }
  0xdd   :  { %1047 = vmatprep.subr.bf16.mxu0 %v1817_v0 }
  0xe0   :  { %1048 = vmatpush1.bf16.msra.mxu0 %v1815_v1  ;;  %v1105_v1 = vcombine.low %v1100_v62, %v1104_v63 }
  0xe1   :  { %1049 = vmatprep.subr.bf16.mxu0 %v1823_v2 }
  0xe2   :  { %v1112_v2 = vrot.slane %v1105_v1, %v1086_v53 }
  0xe4   :  { %1050 = vmatpush1.bf16.msra.mxu0 %v1821_v3 }
  0xe5   :  { %1051 = vmatprep.subr.bf16.mxu0 %v1829_v4 }
  0xe8   :  { %1052 = vmatpush1.bf16.msra.mxu0 %v1827_v5 }
  0xe9   :  { %1053 = vmatprep.subr.bf16.mxu0 %v1835_v6 }
  0xec   :  { %1054 = vmatpush1.bf16.msra.mxu0 %v1833_v7 }
  0xed   :  { %1055 = vmatprep.subr.bf16.mxu0 %v1841_v8 }
  0xf0   :  { %1056 = vmatpush1.bf16.msra.mxu0 %v1839_v10 }
  0xf1   :  { %1057 = vmatprep.subr.bf16.mxu0 %v1847_v11 }
  0xf4   :  { %1058 = vmatpush1.bf16.msra.mxu0 %v1845_v12 }
  0xf5   :  { %1059 = vmatprep.subr.bf16.mxu0 %v1853_v14 }
  0xf8   :  { %1060 = vmatpush1.bf16.msra.mxu0 %v1851_v15  ;;  %v1894_v15 = vld [vmem:[#allocation9] sm:$0xff]  }
  0xf9   :  { %1061 = vmatprep.subr.bf16.mxu0 %v1859_v16  ;;  %v1895_v16 = vld [vmem:[#allocation9 + $0x8] sm:$0xff]  }
  0xfc   :  { %1062 = vmatpush1.bf16.msra.mxu0 %v1857_v17  ;;  %v1896_v17 = vld [vmem:[#allocation9 + $0x10] sm:$0xff]  }
  0xfd   :  { %1063 = vmatprep.subr.bf16.mxu0 %v1865_v18  ;;  %v1897_v18 = vld [vmem:[#allocation9 + $0x18] sm:$0xff]  }
 0x100   :  { %1064 = vmatpush1.bf16.msra.mxu0 %v1863_v19  ;;  %v1898_v19 = vld [vmem:[#allocation9 + $0x20] sm:$0xff]  }
 0x101   :  { %1065 = vmatprep.subr.bf16.mxu0 %v1871_v20  ;;  %v1899_v20 = vld [vmem:[#allocation9 + $0x28] sm:$0xff]  }
 0x104   :  { %1066 = vmatpush1.bf16.msra.mxu0 %v1869_v21  ;;  %v1900_v21 = vld [vmem:[#allocation9 + $0x30] sm:$0xff]  }
 0x105   :  { %1067 = vmatprep.subr.bf16.mxu0 %v1877_v22  ;;  %v1901_v22 = vld [vmem:[#allocation9 + $0x38] sm:$0xff]  }
 0x108   :  { %1068 = vmatpush1.bf16.msra.mxu0 %v1875_v23 }
 0x10b   :  { %1070 = vmatmul.mubr.bf16.vlgmr.msra.gmra.mrb[0].mxu0 %v263_v24  ;;  %v1584_v24 = vld [vmem:[%s2202_s4] ss:$0 sm:$0xff]  ;;  %s2042_s4 = smov [#allocation11]  }
 0x10c   :  { %s1444_s30 = sshll.u32 %s2042_s4, 4  ;;  %s1445_s30 = int_to_ptr.vmem [resolvable:$true] %s1444_s30 }
 0x10d   :  { %s2000_s8 = scalar_lea.vmem %s1445_s30, 32  ;;  %p2005_p5 = scmp.lt.s32.totalorder %s1445_s30, %s1445_s30 }
 0x10e   :  { %p2001_p4 = scmp.ne.s32.totalorder %s1445_s30, %s2000_s8  ;;  %p2006_p6 = scmp.lt.s32.totalorder %s2000_s8, %s2000_s8 }
 0x110   :  { %p2007_p7 = por %p2006_p6, %p2005_p5 }
 0x112   :  { %p2008_p8 = pnand %p2007_p7, %p2001_p4 }
 0x168   :  { %v948_v42 = vpop.f32.mrb[0].mxu1 }
 0x169   :  { %v950_v43 = vpop.f32.mrb[1].mxu1 }
 0x16a   :  { %v952_v44 = vpop.f32.mrb[2].mxu1 }
 0x16b   :  { %v953_v45 = vpop.f32.mrb[3].mxu1 }
 0x1de   :  { %v1071_v49 = vpop.f32.mrb[0].mxu0 }
 0x1df   :  { %v1662_v50 = vadd.f32 %v1071_v49, %v948_v42  ;;  %v1073_v51 = vpop.f32.mrb[1].mxu0 }
 0x1e0   :  { %v1663_v52 = vadd.f32 %v1073_v51, %v950_v43  ;;  %v1075_v54 = vpop.f32.mrb[2].mxu0  ;;  %v1430_v43 = vand.u32 127, %v221_v9 }
 0x1e1   :  { %v1076_v57 = vpop.f32.mrb[3].mxu0 }
 0x1e2   :  { %v1080_v59 = vcombine.low %v1662_v50, %v1663_v52  ;;  %vm1431_vm1 = vcmp.ge.s32.totalorder %v1430_v43, 20  ;;  %vm1432_vm2 = vcmp.lt.s32.totalorder %v1430_v43, 40 }
 0x1e3   :  { %vm1433_vm3 = vmand %vm1431_vm1, %vm1432_vm2 }
 0x1e4   :  { %v1087_v61 = vrot.slane %v1080_v59, %v1086_v53 }
 0x1e6   :  { %v1089_v0 = vadd.f32 %v1087_v61, %v86_v60 }
 0x1e8   :  { %1090 = vst [vmem:[#allocation2] sm:$0xf] %v1089_v0 }
 0x1ef   :  { %v1094_v3 = vld [vmem:[#allocation2] sm:$0xf] }
 0x1f0   :  { %v1114_v4 = vadd.f32 %v1112_v2, %v1094_v3 }
 0x1f2   :  { %v1583_v5 = vmul.f32 -1.442695, %v1114_v4 }
 0x1f4   :  { %1902 = vpow2.f32 %v1583_v5 }
 0x1fe   :  { %v1903_v6 = vpop.eup %1902 }
 0x1ff   :  { %v1118_v13 = vadd.f32 1.0, %v1903_v6 }
 0x201   :  { %1904 = vrcp.f32 %v1118_v13 }
 0x20b   :  { %v1905_v7 = vpop.eup %1904 }
 0x20c   :  { %v1121_v8 = vmul.f32 %v1905_v7, %v1114_v4 }
 0x20e   :  { %v1129_v10 = vrot.slane %v1121_v8, %v1086_v53 }
 0x210   :  { %v1130_v11 = vcombine.high %v1129_v10, %v1129_v10  ;;  %v1133_v14 = vpack.c.bf16 %v1129_v10, %v1129_v10 }
 0x212   :  { %v1134_v12 = vpack.c.bf16 %v1130_v11, %v1130_v11 }
 0x214   :  { %1302 = vmatprep.mubr.bf16.mxu1 %v1134_v12 }
 0x215   :  { %1303 = vmatmul.mubr.bf16.vlgmr.msra.gmra.mrb[4].mxu1 %v1133_v14 }
 0x216   :  { %1643 = vmatpush3.bf16.msra.mxu1 %v1894_v15  ;;  %1658 = vmatprep.mubr.msk.bf16.mxu1 %vm2041_vm0, %v2039_v25 }
 0x217   :  { %1644 = vmatprep.subr.bf16.mxu1 %v2039_v25 }
 0x21a   :  { %1645 = vmatpush3.bf16.msra.mxu1 %v1895_v16 }
 0x21b   :  { %1646 = vmatprep.subr.bf16.mxu1 %v2039_v25 }
 0x21e   :  { %1647 = vmatpush3.bf16.msra.mxu1 %v1896_v17 }
 0x21f   :  { %1648 = vmatprep.subr.bf16.mxu1 %v2039_v25 }
 0x222   :  { %1649 = vmatpush3.bf16.msra.mxu1 %v1897_v18 }
 0x223   :  { %1650 = vmatprep.subr.bf16.mxu1 %v2039_v25 }
 0x226   :  { %1651 = vmatpush3.bf16.msra.mxu1 %v1898_v19 }
 0x227   :  { %1652 = vmatprep.subr.bf16.mxu1 %v2039_v25 }
 0x22a   :  { %1653 = vmatpush3.bf16.msra.mxu1 %v1899_v20 }
 0x22b   :  { %1654 = vmatprep.subr.bf16.mxu1 %v2039_v25 }
 0x22e   :  { %1655 = vmatpush3.bf16.msra.mxu1 %v1900_v21 }
 0x22f   :  { %1656 = vmatprep.subr.bf16.mxu1 %v2039_v25  ;;  %v1602_v25 = vld [vmem:[%s2204_s6] ss:$0 sm:$0xff] }
 0x232   :  { %1657 = vmatpush3.bf16.msra.mxu1 %v1901_v22 }
 0x2e8   :  { %v1627_v23 = vpop.f32.mrb[4].mxu1 }
 0x2e9   :  { %v1628_v26 = vpop.f32.mrb[5].mxu1 }
 0x2ea   :  { %v1629_v28 = vadd.f32 %v1628_v26, %v1627_v23  ;;  %v1630_v29 = vpop.f32.mrb[6].mxu1 }
 0x2eb   :  { %v1631_v30 = vpop.f32.mrb[7].mxu1 }
 0x2ec   :  { %v1305_v31 = vadd.f32 %v1629_v28, %v1584_v24 }
 0x2ee   :  { %v1601_v32 = vmul.f32 -1.442695, %v1305_v31 }
 0x2f0   :  { %1906 = vpow2.f32 %v1601_v32 }
 0x2fa   :  { %v1907_v33 = vpop.eup %1906 }
 0x2fb   :  { %v1313_v34 = vadd.f32 1.0, %v1907_v33 }
 0x2fd   :  { %1908 = vrcp.f32 %v1313_v34 }
 0x307   :  { %v1909_v27 = vpop.eup %1908 }
 0x308   :  { %v1316_v35 = vmul.f32 %v1909_v27, %v1305_v31 }
 0x30a   :  { %v1317_v36 = vpack.c.bf16 %v1316_v35, %v1316_v35 }
 0x30c   :  { %1659 = vmatmul.mubr.bf16.vlgmr.msra.gmra.mrb[8].mxu1 %v1317_v36 }
 0x3df   :  { %v1423_v37 = vpop.f32.mrb[8].mxu1 }
 0x3e0   :  { %v1424_v38 = vadd.f32 %v1602_v25, %v1423_v37  ;;  %v1660_v39 = vpop.f32.mrb[9].mxu1 }
 0x3e1   :  { %v1426_v40 = vpop.f32.mrb[10].mxu1 }
 0x3e2   :  { %v1434_v41 = vmul.f32 1.442695, %v1424_v38  ;;  %v1661_v42 = vpop.f32.mrb[11].mxu1 }
 0x3e4   :  { %1910 = vpow2.f32 %v1434_v41 }
 0x3ee   :  { %v1911_v44 = vpop.eup %1910 }
 0x3ef   :  { %v1436_v45 = vsel %vm1433_vm3, %v1911_v44, %v1424_v38 }
 0x3f0   :  { %1437 = vst [vmem:[#allocation11] sm:$0x3] %v1436_v45 }
 0x3f1   :  { %2011 = shalt.err (!%p2008_p8)
}
 0x3f2   :  { %s2012_s10 = scalar_lea.hbm %s2205_s7, 32 }
 0x3f3   :  { %p2013_p9 = scmp.ne.s32.totalorder %s2205_s7, %s2012_s10  ;;  %p2016_p10 = scmp.lt.u32.totalorder %s2012_s10, %s2205_s7 }
 0x3f5   :  { %p2018_p11 = pnand %p2016_p10, %p2013_p9 }
 0x3f7   :  { %2021 = shalt.err (!%p2018_p11)
}
 0x3f8   :  { %1447 = dma.vmem_to_hbm [thread:$0]  %s1445_s30, 32, %s2205_s7, [#allocation5]  }
 0x3f9   :  { %2028 = dma.done.wait [#allocation5], 32  }
 0x3fa   :  { %2029 = vsyncadd [#allocation5], 4294967264 }
 0x3fb   :  { %1451 = vsyncpa [#allocation4], 1 }
 0x3fc   :  { %1452 = vsyncpa [#allocation7], 1 }
 0x3fd   :  { %1453 = vsyncpa [#allocation10], 1 }
 0x3fe   :  { %1454 = vsyncpa [#allocation5], 1 }

</bundles_post_ra>
